<compile_context>
chip_gen: v6e
topology: v6e:2x2x1
jax: 0.10.0
libtpu: 0.0.40
codegen_flags: <defaults>
</compile_context>

<pallas_src>
import jax
import jax.numpy as jnp
from jax.experimental import pallas as pl
from jax.experimental.pallas import tpu as pltpu

_LANE = 128


def _sin_scale_kernel(x_ref, o_ref):
    # Upcast once to f32 (no-op for f32 inputs), sin + scale, single downcast
    # on the store.  NOTE: jnp.sin lowers to a VPU range-reduction + polynomial
    # (it is not an EUP op); kept at full precision to match the torch.sin
    # reference.  If profiling on v7x shows the VALU slot saturating, a shorter
    # minimax polynomial here is the lever to get back to the HBM roofline.
    xv = x_ref[...].astype(jnp.float32)
    o_ref[...] = (jnp.sin(xv) * jnp.float32(30.0)).astype(o_ref.dtype)


def _target_block_bytes() -> int:
    """Per-buffer block size, tuned by TPU generation.

    v7x: at 3.2 TB/s a 2 MiB block moves in ~1.3 us, so the ~0.35 us grid-step
    overhead is ~25% of the step -> use 8 MiB blocks (<10% overhead).
    v5e/v6e: 4 MiB is already well under 10% overhead and stays comfortably
    inside scoped VMEM.
    """
    try:
        kind = jax.devices()[0].device_kind.lower()
    except Exception:
        kind = ""
    if "v7" in kind:
        return 8 * 1024 * 1024
    return 4 * 1024 * 1024


def _run_slab(slab: jax.Array, out_dtype, donate: bool) -> jax.Array:
    """sin(x)*30 over a lane-dense (rows, 128) slab with one pallas_call."""
    rows = slab.shape[0]
    in_dtype = slab.dtype
    in_isz = jnp.dtype(in_dtype).itemsize
    out_isz = jnp.dtype(out_dtype).itemsize

    # Packed-sublane granularity that keeps both input and output block
    # layouts friendly (f32 -> 8 rows, bf16 -> 16, int8/fp8 -> 32).
    sub = 8 * max(1, 4 // min(in_isz, out_isz))

    block_bytes = _target_block_bytes()
    row_bytes = _LANE * max(in_isz, out_isz)
    target_rows = max(sub, (block_bytes // row_bytes) // sub * sub)

    if rows <= sub:
        # Tiny slab: a full-array block is always a legal block shape.
        block_rows = rows
    else:
        block_rows = min(target_rows, rows)
        # Megacore: ensure the grid has at least 2 steps so both v7x
        # TensorCores get a slice of the work ("parallel" grid axis).
        half_rows = pl.cdiv(pl.cdiv(rows, 2), sub) * sub
        block_rows = max(sub, min(block_rows, half_rows))

    grid = (pl.cdiv(rows, block_rows),)

    # 2 buffers (double-buffering) x (input + output) blocks, plus headroom.
    vmem_limit = min(48 * 1024 * 1024, 4 * block_rows * row_bytes + 8 * 1024 * 1024)

    alias = {0: 0} if (donate and in_dtype == jnp.dtype(out_dtype)) else {}

    return pl.pallas_call(
        _sin_scale_kernel,
        out_shape=jax.ShapeDtypeStruct((rows, _LANE), out_dtype),
        grid_spec=pltpu.PrefetchScalarGridSpec(
            num_scalar_prefetch=0,
            grid=grid,
            in_specs=[pl.BlockSpec((block_rows, _LANE), lambda i: (i, 0))],
            out_specs=pl.BlockSpec((block_rows, _LANE), lambda i: (i, 0)),
        ),
        compiler_params=pltpu.CompilerParams(
            dimension_semantics=("parallel",),
            vmem_limit_bytes=vmem_limit,
        ),
        input_output_aliases=alias,
    )(slab)


def sin_times_30(x: jax.Array, donate: bool = False) -> jax.Array:
    """Computes sin(x) * 30 with a Pallas TPU kernel.  Works for any shape.

    Pass donate=True only if the caller can give up `x`'s buffer (enables
    in-place aliasing of the pallas_call output onto the input).
    """
    orig_shape = x.shape
    orig_dtype = x.dtype
    # torch.sin promotes integer inputs to floating point; mirror that.
    # (float64 inputs are computed in float32 on TPU.)
    out_dtype = orig_dtype if jnp.issubdtype(orig_dtype, jnp.floating) else jnp.float32

    n = x.size
    if n == 0:
        return jnp.zeros(orig_shape, out_dtype)

    flat = x.reshape(-1)

    if n % _LANE == 0:
        # Fast path: zero-copy lane-dense slab.  Any lane-aligned size works —
        # a ragged last row-block is masked by Pallas, so no sub*128 alignment
        # is required and no host-side pad/slice copies are made.
        out = _run_slab(flat.reshape(n // _LANE, _LANE), out_dtype, donate)
        out = out.reshape(-1)
    else:
        # True lane remainder (< 128 elements): pad once up to the next lane
        # multiple and run a single pallas_call, then slice.  Pad elements map
        # to sin(0)*30 = 0 and are dropped; no second launch, no concatenate.
        pad = _LANE - (n % _LANE)
        padded = jnp.pad(flat, (0, pad))
        out = _run_slab(padded.reshape(-1, _LANE), out_dtype, False)
        out = out.reshape(-1)[:n]

    return out.reshape(orig_shape)


if __name__ == "__main__":
    key = jax.random.PRNGKey(0)
    # Small NCHW-style input consistent with a generic elementwise module.
    x = jax.random.normal(key, (2, 4, 16, 16), dtype=jnp.float32)

    y = sin_times_30(x)
    jax.block_until_ready(y)

    # Correctness check against plain JAX reference (matches torch.sin(x) * 30).
    y_ref = jnp.sin(x) * 30.0
    assert y.shape == x.shape and y.dtype == x.dtype
    assert jnp.allclose(y, y_ref, atol=1e-5, rtol=1e-5)

    # Also exercise a ragged (non-lane-aligned) shape through the pad path.
    x2 = jax.random.normal(jax.random.PRNGKey(1), (3, 5, 7), dtype=jnp.float32)
    y2 = sin_times_30(x2)
    jax.block_until_ready(y2)
    assert jnp.allclose(y2, jnp.sin(x2) * 30.0, atol=1e-5, rtol=1e-5)

    print("KERNEL_OK")
</pallas_src>

<mosaic_0001>
module attributes {stable_mosaic.version = 11 : i64} {
  func.func @_sin_scale_kernel(%arg0: i32, %arg1: memref<8x128xf32, #tpu.memory_space<vmem>>, %arg2: memref<8x128xf32, #tpu.memory_space<vmem>>) attributes {dimension_semantics = [#tpu.dimension_semantics<parallel>], iteration_bounds = array<i64: 2>, scalar_prefetch = 0 : i64, scratch_operands = 0 : i64, tpu.core_type = #tpu.core_type<tc>, window_params = [{transform_indices = @transform_0, window_bounds = array<i64: 8, 128>}, {transform_indices = @transform_1, window_bounds = array<i64: 8, 128>}]} {
    %c0 = arith.constant 0 : index
    %c0_0 = arith.constant 0 : index
    %0 = vector.load %arg1[%c0, %c0_0] : memref<8x128xf32, #tpu.memory_space<vmem>>, vector<8x128xf32>
    %1 = math.sin %0 : vector<8x128xf32>
    %cst = arith.constant 3.000000e+01 : f32
    %2 = vector.broadcast %cst : f32 to vector<8x128xf32>
    %3 = arith.mulf %1, %2 : vector<8x128xf32>
    %c0_1 = arith.constant 0 : index
    %c0_2 = arith.constant 0 : index
    %4 = vector.load %arg2[%c0_1, %c0_2] : memref<8x128xf32, #tpu.memory_space<vmem>>, vector<8x128xf32>
    tpu.vector_store %arg2[%c0_1, %c0_2], %3 {strides = array<i32>} : memref<8x128xf32, #tpu.memory_space<vmem>>, vector<8x128xf32>,
    return
  }
  func.func @transform_0(%arg0: i32) -> (i32, i32) {
    %c0_i32 = arith.constant 0 : i32
    %c0_i32_0 = arith.constant 0 : i32
    return %arg0, %c0_i32 : i32, i32
  }
  func.func @transform_1(%arg0: i32) -> (i32, i32) {
    %c0_i32 = arith.constant 0 : i32
    %c0_i32_0 = arith.constant 0 : i32
    return %arg0, %c0_i32 : i32, i32
  }
}

</mosaic_0001>

<bundles_post_ra>
// kernel: tpu_custom_call.1
= control target key start
LH: loop header
LB: loop body
LE: loop exit
PB: predicated region body
PF: predicated region fallthrough
CT: control target
= control target key end

     0   :  { %6 = vsyncpa [#allocation3], 0  ;;  %s677_s0 = inlined_call_operand.hbm [shape: f32[16,128], index: 0, kind: input, shape index: {}]   ;;  %s678_s1 = inlined_call_operand.hbm [shape: f32[16,128], index: 1, kind: output, shape index: {}]  }
   0x1   :  { %8 = vsyncpa [#allocation3 + $0x1], 0 }
   0x2   :  { %9 = vsyncpa [#allocation4], 0 }
   0x3   :  { %11 = vsyncpa [#allocation4 + $0x1], 0  ;;  %s511_s6 = smov 0   ;;  %s513_s7 = smov 0  }
   0x4   :  { %s515_s8 = smov 0   ;;  %s517_s9 = smov 0  }
   0x5 LB: > { %s532_s10 = sadd.s32 4294967295, %s491_s9   ;;  %s323_s11 = sadd.s32 4294967294, %s491_s9   ;;  %s491_s9 = sphi %s517_s9, %s695_s9   ;;  %s487_s8 = sphi %s515_s8, %s694_s8   ;;  %s483_s7 = sphi %s513_s7, %s693_s7   ;;  %s479_s6 = sphi %s511_s6, %s692_s6  }
   0x6   : > { %s536_s12 = sadd.s32 1, %s491_s9   ;;  %s24_s13 = sadd.s32 1, %s487_s8 }
   0x7   : > { %s21_s14 = ssub.s32 %s491_s9, %s536_s12  ;;  %p31_p0 = scmp.ne.s32.totalorder %s487_s8, %s483_s7 }
   0x8   : > { %p22_p1 = scmp.eq.s32.totalorder %s21_s14, 0  ;;  %p32_p2 = scmp.eq.s32.totalorder %s491_s9, 0 }
   0x9   : > { %p37_p3 = scmp.ne.s32.totalorder %s483_s7, %s479_s6  ;;  %p38_p4 = scmp.eq.s32.totalorder %s532_s10, 0 }
   0xa   : > { %s548_s15 = scalar_select %p22_p1, %s487_s8, %s24_s13  }
   0xb   : > { %p550_p5 = por %p32_p2, %p31_p0  ;;  %p554_p6 = por %p38_p4, %p37_p3 }
   0xc   : > { %p61_p7 = scmp.eq.s32.totalorder %s532_s10, 1  ;;  %p67_p8 = scmp.eq.s32.totalorder %s323_s11, 1 }
   0xd   : > { %s682_s17 = scalar_select %p554_p6, 1, 0 }
   0xe   : > { %p355_p10 = scmp.lt.s32.totalorder %s491_s9, 2  ;;  %p561_p11 = por %p61_p7, %p31_p0 }
   0xf   : > { %p565_p12 = por %p67_p8, %p37_p3  ;;  %s87_s20 = sand.u32 1, %s487_s8  }
  0x10   : > { %s683_s18 = scalar_select %p561_p11, 1, 0 }
  0x11   : > { %s684_s19 = scalar_select %p565_p12, 1, 0 }
  0x12   : > { %s327_s21 = sshll.u32 %s491_s9, 7  ;;  %s326_s22 = sshll.u32 %s87_s20, 3 }
  0x13   : > { %s574_s25 = scalar_lea.hbm %s677_s0, %s327_s21  ;;  %s91_s26 = scalar_lea.vmem [#allocation2], %s326_s22 }
  0x14   : > { %s98_s27 = sshll.u32 %s91_s26, 4  ;;  %p578_p13 = pnand %p355_p10, %p550_p5  ;;  %s582_s27 = int_to_ptr.vmem [resolvable:$true] %s98_s27 }
  0x15   : > { %s88_s29 = scalar_lea.sflag [#allocation3], %s87_s20  ;;  %s399_s30 = scalar_lea.hbm %s574_s25, 128 }
  0x16   : > { %p400_p2 = scmp.ne.s32.totalorder %s574_s25, %s399_s30  ;;  %p401_p3 = pneg %p578_p13 }
  0x17   : > { %s404_s4 = scalar_lea.hbm %s677_s0, 256  ;;  %p405_p5 = scmp.lt.s32.totalorder %s574_s25, %s677_s0 }
  0x18   : > { %p402_p4 = pnand %p401_p3, %p400_p2  ;;  %p406_p8 = scmp.lt.s32.totalorder %s404_s4, %s399_s30 }
  0x1a   : > { %p403_p7 = pneg %p402_p4  ;;  %p407_p10 = por %p406_p8, %p405_p5 }
  0x1c   : > { %p408_p9 = pnand %p407_p10, %p403_p7 }
  0x1e   : > { %411 = shalt.err (!%p408_p9)
}
  0x1f   : > { %s412_s13 = scalar_lea.vmem %s582_s27, 128  ;;  %s493_s14 = smov [#allocation2]  }
  0x20   : > { %p413_p0 = scmp.ne.s32.totalorder %s582_s27, %s412_s13  ;;  %s417_s16 = sshll.u32 %s493_s14, 4  ;;  %s418_s16 = int_to_ptr.vmem [resolvable:$false] %s417_s16 }
  0x21   : > { %s419_s20 = scalar_lea.vmem %s418_s16, 256  ;;  %p420_p4 = scmp.lt.s32.totalorder %s582_s27, %s418_s16 }
  0x22   : > { %p415_p1 = pnand %p413_p0, %p401_p3  ;;  %p421_p12 = scmp.lt.s32.totalorder %s419_s20, %s412_s13 }
  0x24   : > { %p416_p2 = pneg %p415_p1  ;;  %p422_p11 = por %p421_p12, %p420_p4 }
  0x26   : > { %p423_p6 = pnand %p422_p11, %p416_p2 }
  0x28   : > { %426 = shalt.err (!%p423_p6)
}
  0x29   : > { %350 = dma.hbm_to_vmem [thread:$0]  (!%p578_p13), %s574_s25, 128, %s582_s27, %s88_s29  }
  0x2a   : > { %p686_p9 = scmp.lt.s32.totalorder %s491_s9, 3  ;;  %p687_p7 = scmp.ge.s32.totalorder %s491_s9, 1 }
  0x2c   : > { %p104_p0 = pnand %p687_p7, %p686_p9 }
  0x2d   : > { %s609_s21 = sand.u32 (!%p104_p0), 1, %s483_s7   ;;  %p688_p6 = scmp.ne.s32.totalorder (!%p104_p0), %s682_s17, 0 }
  0x2e   : > { %107 = sbr.rel (%p104_p0) target bundleno = 151 (0x97), region = 24  ;;  %s329_s22 = sshll.u32 (!%p104_p0), %s609_s21, 3 }
  0x2f   : > { %s110_s23 = scalar_lea.sflag (!%p104_p0), [#allocation3], %s609_s21  ;;  %s113_s24 = scalar_lea.vmem (!%p104_p0), [#allocation2], %s329_s22 }
  0x33   : > { %470 = dma.done.wait (%p688_p6), %s110_s23, 128  }
  0x34   : > { %472 = vsyncadd (%p688_p6), %s110_s23, 4294967168  ;;  %v619_v0 = vld [vmem:[%s113_s24] sm:$0xff]  ;;  %v494_v12 = vmov 683565275   ;;  %v495_v14 = vmov 2475754826  }
  0x35   : > { %v136_v1 = vand.u32 2139095040, %v619_v0  ;;  %v133_v3 = vand.u32 2147483647, %v619_v0  ;;  %v496_v16 = vmov 2131351028   ;;  %vm135_vm7 = vcmp.lt.s32.totalorder %v619_v0, 0 }
  0x36   : > { %v497_v18 = vmov 2102212464   ;;  %v498_v20 = vmov 920167782   ;;  %v499_v27 = vmov 1326507024   ;;  %vm225_vm12 = vweird.f32 %v619_v0 }
  0x37   : > { %v137_v2 = vshrl.u32 %v136_v1, 23  ;;  %v140_v6 = vand.u32 8388607, %v133_v3  ;;  %vm134_vm8 = vcmp.le.f32.partialorder %v133_v3, 0.7853982  ;;  %s131_s17 = scalar_lea.vmem [#allocation5], %s329_s22 }
  0x38   : > { %s253_s25 = sshll.u32 %s131_s17, 4  ;;  %s336_s26 = sshll.u32 %s532_s10, 7  ;;  %s254_s25 = int_to_ptr.vmem [resolvable:$true] %s253_s25 }
  0x39   : > { %v331_v4 = vadd.s32 4294967169, %v137_v2  ;;  %v141_v9 = vor.u32 8388608, %v140_v6  ;;  %s251_s29 = scalar_lea.hbm %s678_s1, %s336_s26  ;;  %s240_s30 = scalar_lea.sflag [#allocation4], %s609_s21 }
  0x3a   : > { %s427_s2 = scalar_lea.vmem %s254_s25, 128  ;;  %p689_p12 = scmp.ne.s32.totalorder %s683_s18, 0 }
  0x3b   : > { %v143_v5 = vadd.s32 1, %v331_v4  ;;  %v181_v29 = vshll.u32 %v141_v9, 8  ;;  %p428_p11 = scmp.ne.s32.totalorder %s254_s25, %s427_s2  ;;  %s500_s3 = smov [#allocation5]  }
  0x3c   : > { %s431_s4 = sshll.u32 %s500_s3, 4  ;;  %s432_s4 = int_to_ptr.vmem [resolvable:$false] %s431_s4 }
  0x3d   : > { %vm144_vm0 = vcmp.gt.s32.totalorder %v143_v5, 0  ;;  %p429_p13 = pnand %p428_p11, %p689_p12  ;;  %s433_s5 = scalar_lea.vmem %s432_s4, 256 }
  0x3e   : > { %v145_v7 = vsel %vm144_vm0, %v143_v5, 0  ;;  %p434_p3 = scmp.lt.s32.totalorder %s254_s25, %s432_s4  ;;  %p435_p5 = scmp.lt.s32.totalorder %s433_s5, %s427_s2 }
  0x3f   : > { %v147_v8 = vand.u32 31, %v145_v7  ;;  %v146_v10 = vshrl.u32 %v145_v7, 5  ;;  %p430_p1 = pneg %p429_p13 }
  0x40   : > { %p436_p8 = por %p435_p5, %p434_p3 }
  0x41   : > { %v148_v11 = vsub.s32 32, %v147_v8  ;;  %v150_v13 = vshll.u32 %v494_v12, %v147_v8  ;;  %v153_v15 = vshll.u32 %v495_v14, %v147_v8  ;;  %v156_v17 = vshll.u32 %v496_v16, %v147_v8 }
  0x42   : > { %v159_v19 = vshll.u32 %v497_v18, %v147_v8  ;;  %v162_v21 = vshll.u32 %v498_v20, %v147_v8  ;;  %vm165_vm1 = vcmp.lt.s32.totalorder %v146_v10, 1  ;;  %vm168_vm2 = vcmp.lt.s32.totalorder %v146_v10, 4  ;;  %p437_p10 = pnand %p436_p8, %p430_p1 }
  0x43   : > { %v149_v22 = vshrl.u32 %v494_v12, %v148_v11  ;;  %v151_v23 = vshrl.u32 %v495_v14, %v148_v11  ;;  %v154_v24 = vshrl.u32 %v496_v16, %v148_v11  ;;  %v157_v25 = vshrl.u32 %v497_v18, %v148_v11 }
  0x44   : > { %v160_v26 = vshrl.u32 %v498_v20, %v148_v11  ;;  %v163_v28 = vshrl.u32 %v499_v27, %v148_v11  ;;  %vm166_vm3 = vcmp.lt.s32.totalorder %v146_v10, 2  ;;  %vm167_vm4 = vcmp.lt.s32.totalorder %v146_v10, 3 }
  0x45   : > { %v152_v30 = vor.u32 %v151_v23, %v150_v13  ;;  %v155_v31 = vor.u32 %v154_v24, %v153_v15  ;;  %v158_v32 = vor.u32 %v157_v25, %v156_v17 }
  0x46   : > { %v161_v33 = vor.u32 %v160_v26, %v159_v19  ;;  %v164_v34 = vor.u32 %v163_v28, %v162_v21 }
  0x47   : > { %v169_v35 = vsel %vm165_vm1, %v149_v22, %v152_v30  ;;  %v170_v36 = vsel %vm168_vm2, %v158_v32, 2102212464  ;;  %v173_v37 = vsel %vm165_vm1, %v152_v30, %v155_v31  ;;  %v177_v38 = vsel %vm165_vm1, %v155_v31, %v158_v32 }
  0x48   : > { %v171_v39 = vsel %vm167_vm4, %v155_v31, %v170_v36  ;;  %v174_v40 = vsel %vm168_vm2, %v161_v33, 920167782  ;;  %v178_v41 = vsel %vm168_vm2, %v164_v34, 1326507024 }
  0x49   : > { %v175_v42 = vsel %vm167_vm4, %v158_v32, %v174_v40  ;;  %v179_v43 = vsel %vm167_vm4, %v161_v33, %v178_v41  ;;  %v172_v44 = vsel %vm166_vm3, %v169_v35, %v171_v39 }
  0x4a   : > { %v176_v45 = vsel %vm166_vm3, %v173_v37, %v175_v42  ;;  %v180_v46 = vsel %vm166_vm3, %v177_v38, %v179_v43  ;;  %v188_v51 = vmul.u32 %v181_v29, %v172_v44 }
  0x4b   : > { %v625_v47 = vmul.u32.u64.low %v181_v29, %v180_v46  ;;  %v626_v48 = vmul.u32.u64.high %v181_v29, %v180_v46, %v625_v47  ;;  %v628_v49 = vmul.u32.u64.low %v181_v29, %v176_v45  ;;  %v629_v50 = vmul.u32.u64.high %v181_v29, %v176_v45, %v628_v49 }
  0x4d   : > { %vm190_vm5 = vc.u32 %v626_v48, %v628_v49  ;;  %v191_v52 = vadd.s32 1, %v629_v50  ;;  %v189_v63 = vadd.s32 %v628_v49, %v626_v48 }
  0x4f   : > { %v192_v53 = vsel %vm190_vm5, %v191_v52, %v629_v50 }
  0x50   : > { %v193_v54 = vadd.s32 %v192_v53, %v188_v51 }
  0x52   : > { %v194_v55 = vadd.s32 536870912, %v193_v54 }
  0x54   : > { %v195_v56 = vshrl.u32 %v194_v55, 30 }
  0x56   : > { %v196_v57 = vshll.u32 %v195_v56, 30  ;;  %v219_v14 = vsub.s32 4, %v195_v56 }
  0x58   : > { %v197_v58 = vsub.s32 %v193_v54, %v196_v57  ;;  %v220_v17 = vsel %vm135_vm7, %v219_v14, %v195_v56 }
  0x59   : > { %v222_v19 = vsel %vm134_vm8, 0, %v220_v17 }
  0x5a   : > { %v199_v59 = vsub.s32 0, %v197_v58  ;;  %v226_v20 = vadd.s32 3, %v222_v19 }
  0x5c   : > { %v332_v60 = vmin.u32 %v199_v59, %v197_v58  ;;  %v227_v21 = vand.u32 3, %v226_v20 }
  0x5e   : > { %v201_v61 = vclz %v332_v60  ;;  %vm232_vm9 = vcmp.eq.s32.totalorder %v227_v21, 2  ;;  %vm229_vm10 = vcmp.eq.s32.totalorder %v227_v21, 0  ;;  %vm228_vm11 = vcmp.lt.s32.totalorder %v227_v21, 2 }
  0x60   : > { %v333_v62 = vadd.s32 4294967294, %v201_v61 }
  0x62   : > { %vm334_vm6 = vcmp.lt.s32.totalorder %v333_v62, 0 }
  0x63   : > { %v204_v1 = vsel %vm334_vm6, 0, %v333_v62 }
  0x64   : > { %v205_v2 = vsub.s32 32, %v204_v1  ;;  %v206_v4 = vshll.u32 %v197_v58, %v204_v1  ;;  %v209_v5 = vsub.s32 4294967266, %v204_v1 }
  0x66   : > { %v207_v6 = vshrl.u32 %v189_v63, %v205_v2  ;;  %v210_v7 = vadd.s32 127, %v209_v5 }
  0x68   : > { %v208_v8 = vor.u32 %v207_v6, %v206_v4  ;;  %v211_v9 = vshll.u32 %v210_v7, 23 }
  0x6a   : > { %v212_v10 = vor.u32 4788187, %v211_v9  ;;  %v215_v11 = vcvt.s32.f32 %v208_v8 }
  0x6c   : > { %v213_v12 = vand.u32 2147483647, %v212_v10 }
  0x6e   : > { %v216_v13 = vmul.f32 %v215_v11, %v213_v12 }
  0x70   : > { %v217_v15 = vxor.u32 2147483648, %v216_v13 }
  0x72   : > { %v218_v16 = vsel %vm135_vm7, %v217_v15, %v216_v13 }
  0x73   : > { %v221_v18 = vsel %vm134_vm8, %v619_v0, %v218_v16 }
  0x74   : > { %395 = vcosq.f32 %v221_v18 }
  0x75   : > { %397 = vsinq.f32 %v221_v18 }
  0x81   : > { %v396_v22 = vpop.eup %395 }
  0x82   : > { %v398_v23 = vpop.eup %397  ;;  %v233_v24 = vxor.u32 2147483648, %v396_v22 }
  0x83   : > { %v230_v3 = vxor.u32 2147483648, %v398_v23 }
  0x84   : > { %v234_v25 = vsel %vm232_vm9, %v233_v24, %v398_v23 }
  0x85   : > { %v231_v26 = vsel %vm229_vm10, %v396_v22, %v230_v3 }
  0x86   : > { %v235_v27 = vsel %vm228_vm11, %v231_v26, %v234_v25 }
  0x87   : > { %v236_v28 = vsel %vm225_vm12, nan, %v235_v27 }
  0x88   : > { %v237_v29 = vmul.f32 30.0, %v236_v28 }
  0x8a   : > { %238 = vst [vmem:[%s131_s17] sm:$0xff] %v237_v29 }
  0x8b   : > { %440 = shalt.err (!%p437_p10)
}
  0x8c   : > { %s441_s10 = scalar_lea.hbm %s251_s29, 128  ;;  %s445_s14 = scalar_lea.hbm %s678_s1, 256 }
  0x8d   : > { %p442_p2 = scmp.ne.s32.totalorder %s251_s29, %s441_s10  ;;  %p446_p7 = scmp.lt.s32.totalorder %s251_s29, %s678_s1 }
  0x8e   : > { %p447_p0 = scmp.lt.s32.totalorder %s445_s14, %s441_s10 }
  0x8f   : > { %p443_p4 = pnand %p442_p2, %p689_p12 }
  0x90   : > { %p448_p6 = por %p447_p0, %p446_p7 }
  0x91   : > { %p444_p9 = pneg %p443_p4 }
  0x93   : > { %p449_p11 = pnand %p448_p6, %p444_p9 }
  0x95   : > { %452 = shalt.err (!%p449_p11)
}
  0x96   : > { %345 = dma.vmem_to_hbm [thread:$0]  (%p689_p12), %s254_s25, 128, %s251_s29, %s240_s30  }
  0x97 PF: > { %s265_s21 = sand.u32 1, %s479_s6   ;;  %p690_p13 = scmp.ne.s32.totalorder %s684_s19, 0 }
  0x98   : > { %p691_p1 = scmp.ge.s32.totalorder %s491_s9, 2  ;;  %s266_s22 = scalar_lea.sflag [#allocation4], %s265_s21 }
  0x9a   : > { %p352_p3 = pnand %p691_p1, %p690_p13 }
  0x9c   : > { %p353_p5 = pneg %p352_p3 }
  0x9e   : > { %474 = dma.done.wait (%p353_p5), %s266_s22, 128  }
  0x9f   : > { %476 = vsyncadd (%p353_p5), %s266_s22, 4294967168  ;;  %p14_p8 = scmp.ge.s32.totalorder %s536_s12, 4   ;;  %s692_s6 = smov %s483_s7 }
  0xa0   : > { %s693_s7 = smov %s487_s8  ;;  %s694_s8 = smov %s548_s15 }
  0xa1   : > { %s695_s9 = smov %s536_s12  ;;  %16 = sbr.rel (!%p14_p8) target bundleno = 5 (0x5), region = 69 }
  0xa6   :  { %271 = vsyncpa [#allocation3], 1 }
  0xa7   :  { %273 = vsyncpa [#allocation3 + $0x1], 1 }
  0xa8   :  { %274 = vsyncpa [#allocation4], 1 }
  0xa9   :  { %276 = vsyncpa [#allocation4 + $0x1], 1 }

</bundles_post_ra>
